<compile_context>
chip_gen: v7x
topology: tpu7x:2x2x1
jax: 0.10.0
libtpu: 0.0.40
codegen_flags: <defaults>
</compile_context>

<pallas_src>
import functools

import jax
import jax.numpy as jnp
from jax.experimental import pallas as pl
from jax.experimental.pallas import tpu as pltpu


def mlp_kernel(x_ref, w1_ref, b1_ref, w2_ref, b2_ref, w3_ref, o_ref):
    # fc1: [TM,1024] @ [1024,256] -> f32 acc, +bias, ReLU (f32 on the VPU).
    x = x_ref[...].astype(jnp.bfloat16)
    h1 = jnp.dot(x, w1_ref[...].astype(jnp.bfloat16),
                 preferred_element_type=jnp.float32)
    h1 = jnp.maximum(h1 + b1_ref[...], 0.0)
    # fc2: [TM,256] @ [256,64] -> f32, +bias, ReLU.
    h2 = jnp.dot(h1.astype(jnp.bfloat16), w2_ref[...].astype(jnp.bfloat16),
                 preferred_element_type=jnp.float32)
    h2 = jnp.maximum(h2 + b2_ref[...], 0.0)
    # fc3 (no bias): [TM,64] @ [64,4] -> f32, ReLU.
    h3 = jnp.dot(h2.astype(jnp.bfloat16), w3_ref[...].astype(jnp.bfloat16),
                 preferred_element_type=jnp.float32)
    o_ref[...] = jnp.maximum(h3, 0.0).astype(o_ref.dtype)


@functools.partial(jax.jit, static_argnames=("tm",))
def mlp_layout_forward(x, w1, b1, w2, b2, w3, *, tm=1024):
    """x:[B,1024] f32; w1:[1024,256]; b1:[1,256]; w2:[256,64]; b2:[1,64]; w3:[64,4]."""
    B, d_in = x.shape
    h1_dim = w1.shape[1]          # 256
    h2_dim = w2.shape[1]          # 64
    d_out = w3.shape[1]           # 4

    # Batch tile: multiple of 8 sublanes, capped at `tm`, sized to the batch.
    tile_m = int(min(tm, ((B + 7) // 8) * 8))
    n_tiles = pl.cdiv(B, tile_m)
    b_pad = n_tiles * tile_m
    x_in = x if b_pad == B else jnp.pad(x, ((0, b_pad - B), (0, 0)))

    # Full-array blocks with a constant index_map -> fetched once, VMEM-resident.
    resident = lambda a: pl.BlockSpec(a.shape, lambda i, _a=a: (0,) * _a.ndim)

    flops = 2 * B * (d_in * h1_dim + h1_dim * h2_dim + h2_dim * d_out)
    bytes_accessed = (x_in.size * 4 + w1.size * 4 + b1.size * 4 + w2.size * 4
                      + b2.size * 4 + w3.size * 4 + b_pad * d_out * 4)

    out = pl.pallas_call(
        mlp_kernel,
        out_shape=jax.ShapeDtypeStruct((b_pad, d_out), jnp.float32),
        grid=(n_tiles,),
        in_specs=[
            pl.BlockSpec((tile_m, d_in), lambda i: (i, 0)),   # x tile (pipelined)
            resident(w1),
            resident(b1),
            resident(w2),
            resident(b2),
            resident(w3),
        ],
        out_specs=pl.BlockSpec((tile_m, d_out), lambda i: (i, 0)),
        compiler_params=pltpu.CompilerParams(
            dimension_semantics=("parallel",),
        ),
        cost_estimate=pl.CostEstimate(
            flops=flops, transcendentals=0, bytes_accessed=bytes_accessed),
    )(x_in, w1, b1, w2, b2, w3)

    return out[:B]


def init_params(key):
    # Deterministic init mirroring nn.Linear shapes (weights stored [in, out]):
    # fc1: 1024->256 (+bias), fc2: 256->64 (+bias), fc3: 64->4 (no bias).
    k1, k2, k3, k4, k5 = jax.random.split(key, 5)

    def uniform_linear(k, fan_in, shape):
        bound = 1.0 / jnp.sqrt(fan_in)
        return jax.random.uniform(k, shape, jnp.float32, -bound, bound)

    w1 = uniform_linear(k1, 1024, (1024, 256))
    b1 = uniform_linear(k2, 1024, (1, 256))
    w2 = uniform_linear(k3, 256, (256, 64))
    b2 = uniform_linear(k4, 256, (1, 64))
    w3 = uniform_linear(k5, 64, (64, 4))
    return w1, b1, w2, b2, w3


if __name__ == "__main__":
    key = jax.random.PRNGKey(0)
    kx, kp = jax.random.split(key)

    batch = 8
    x = jax.random.normal(kx, (batch, 1024), jnp.float32)
    w1, b1, w2, b2, w3 = init_params(kp)

    out = jax.block_until_ready(mlp_layout_forward(x, w1, b1, w2, b2, w3))
    assert out.shape == (batch, 4)

    # Reference with the same bf16 MXU inputs / f32 accumulation as the kernel.
    xb = x.astype(jnp.bfloat16)
    ref = jnp.maximum(jnp.dot(xb, w1.astype(jnp.bfloat16),
                              preferred_element_type=jnp.float32) + b1, 0.0)
    ref = jnp.maximum(jnp.dot(ref.astype(jnp.bfloat16), w2.astype(jnp.bfloat16),
                              preferred_element_type=jnp.float32) + b2, 0.0)
    ref = jnp.maximum(jnp.dot(ref.astype(jnp.bfloat16), w3.astype(jnp.bfloat16),
                              preferred_element_type=jnp.float32), 0.0)
    assert jnp.allclose(out, ref, atol=2e-3, rtol=2e-3), float(
        jnp.max(jnp.abs(out - ref)))

    # Sanity against the full-f32 PyTorch-equivalent forward (loose: bf16 MXU).
    ref32 = jnp.maximum(x @ w1 + b1, 0.0)
    ref32 = jnp.maximum(ref32 @ w2 + b2, 0.0)
    ref32 = jnp.maximum(ref32 @ w3, 0.0)
    assert jnp.allclose(out, ref32, atol=5e-2, rtol=5e-2), float(
        jnp.max(jnp.abs(out - ref32)))

    print("KERNEL_OK")
</pallas_src>

<mosaic_0001>
module attributes {stable_mosaic.version = 11 : i64} {
  func.func @mlp_kernel(%arg0: i32, %arg1: memref<8x1024xf32, #tpu.memory_space<vmem>>, %arg2: memref<1024x256xf32, #tpu.memory_space<vmem>>, %arg3: memref<1x256xf32, #tpu.memory_space<vmem>>, %arg4: memref<256x64xf32, #tpu.memory_space<vmem>>, %arg5: memref<1x64xf32, #tpu.memory_space<vmem>>, %arg6: memref<64x4xf32, #tpu.memory_space<vmem>>, %arg7: memref<8x4xf32, #tpu.memory_space<vmem>>) attributes {dimension_semantics = [#tpu.dimension_semantics<parallel>], iteration_bounds = array<i64: 1>, scalar_prefetch = 0 : i64, scratch_operands = 0 : i64, tpu.core_type = #tpu.core_type<tc>, window_params = [{transform_indices = @transform_0, window_bounds = array<i64: 8, 1024>}, {pipeline_mode = #tpu.pipeline_mode<synchronous>, transform_indices = @transform_1, window_bounds = array<i64: 1024, 256>}, {pipeline_mode = #tpu.pipeline_mode<synchronous>, transform_indices = @transform_2, window_bounds = array<i64: 1, 256>}, {pipeline_mode = #tpu.pipeline_mode<synchronous>, transform_indices = @transform_3, window_bounds = array<i64: 256, 64>}, {pipeline_mode = #tpu.pipeline_mode<synchronous>, transform_indices = @transform_4, window_bounds = array<i64: 1, 64>}, {pipeline_mode = #tpu.pipeline_mode<synchronous>, transform_indices = @transform_5, window_bounds = array<i64: 64, 4>}, {transform_indices = @transform_6, window_bounds = array<i64: 8, 4>}]} {
    %c0 = arith.constant 0 : index
    %c0_0 = arith.constant 0 : index
    %0 = vector.load %arg1[%c0, %c0_0] : memref<8x1024xf32, #tpu.memory_space<vmem>>, vector<8x1024xf32>
    %1 = arith.truncf %0 : vector<8x1024xf32> to vector<8x1024xbf16>
    %c0_1 = arith.constant 0 : index
    %c0_2 = arith.constant 0 : index
    %2 = vector.load %arg2[%c0_1, %c0_2] : memref<1024x256xf32, #tpu.memory_space<vmem>>, vector<1024x256xf32>
    %3 = arith.truncf %2 : vector<1024x256xf32> to vector<1024x256xbf16>
    %cst = arith.constant dense<0.000000e+00> : vector<8x256xf32>
    %4 = tpu.matmul %1, %3, %cst {dimension_numbers = #tpu.dot_dimension_numbers<[1], [0], [0], [1], [0, 0, 1, 1], [], []>} : vector<8x1024xbf16>, vector<1024x256xbf16>, vector<8x256xf32> -> vector<8x256xf32>
    %c0_3 = arith.constant 0 : index
    %c0_4 = arith.constant 0 : index
    %5 = vector.load %arg3[%c0_3, %c0_4] : memref<1x256xf32, #tpu.memory_space<vmem>>, vector<1x256xf32>
    %6 = vector.broadcast %5 : vector<1x256xf32> to vector<8x256xf32>
    %7 = arith.addf %4, %6 : vector<8x256xf32>
    %cst_5 = arith.constant 0.000000e+00 : f32
    %8 = vector.broadcast %cst_5 : f32 to vector<8x256xf32>
    %9 = arith.maximumf %7, %8 : vector<8x256xf32>
    %10 = arith.truncf %9 : vector<8x256xf32> to vector<8x256xbf16>
    %c0_6 = arith.constant 0 : index
    %c0_7 = arith.constant 0 : index
    %11 = vector.load %arg4[%c0_6, %c0_7] : memref<256x64xf32, #tpu.memory_space<vmem>>, vector<256x64xf32>
    %12 = arith.truncf %11 : vector<256x64xf32> to vector<256x64xbf16>
    %cst_8 = arith.constant dense<0.000000e+00> : vector<8x64xf32>
    %13 = tpu.matmul %10, %12, %cst_8 {dimension_numbers = #tpu.dot_dimension_numbers<[1], [0], [0], [1], [0, 0, 1, 1], [], []>} : vector<8x256xbf16>, vector<256x64xbf16>, vector<8x64xf32> -> vector<8x64xf32>
    %c0_9 = arith.constant 0 : index
    %c0_10 = arith.constant 0 : index
    %14 = vector.load %arg5[%c0_9, %c0_10] : memref<1x64xf32, #tpu.memory_space<vmem>>, vector<1x64xf32>
    %15 = vector.broadcast %14 : vector<1x64xf32> to vector<8x64xf32>
    %16 = arith.addf %13, %15 : vector<8x64xf32>
    %cst_11 = arith.constant 0.000000e+00 : f32
    %17 = vector.broadcast %cst_11 : f32 to vector<8x64xf32>
    %18 = arith.maximumf %16, %17 : vector<8x64xf32>
    %19 = arith.truncf %18 : vector<8x64xf32> to vector<8x64xbf16>
    %c0_12 = arith.constant 0 : index
    %c0_13 = arith.constant 0 : index
    %20 = vector.load %arg6[%c0_12, %c0_13] : memref<64x4xf32, #tpu.memory_space<vmem>>, vector<64x4xf32>
    %21 = arith.truncf %20 : vector<64x4xf32> to vector<64x4xbf16>
    %cst_14 = arith.constant dense<0.000000e+00> : vector<8x4xf32>
    %22 = tpu.matmul %19, %21, %cst_14 {dimension_numbers = #tpu.dot_dimension_numbers<[1], [0], [0], [1], [0, 0, 1, 1], [], []>} : vector<8x64xbf16>, vector<64x4xbf16>, vector<8x4xf32> -> vector<8x4xf32>
    %cst_15 = arith.constant 0.000000e+00 : f32
    %23 = vector.broadcast %cst_15 : f32 to vector<8x4xf32>
    %24 = arith.maximumf %22, %23 : vector<8x4xf32>
    %c0_16 = arith.constant 0 : index
    %c0_17 = arith.constant 0 : index
    %25 = vector.load %arg7[%c0_16, %c0_17] : memref<8x4xf32, #tpu.memory_space<vmem>>, vector<8x4xf32>
    tpu.vector_store %arg7[%c0_16, %c0_17], %24 {strides = array<i32>} : memref<8x4xf32, #tpu.memory_space<vmem>>, vector<8x4xf32>,
    return
  }
  func.func @transform_0(%arg0: i32) -> (i32, i32) {
    %c0_i32 = arith.constant 0 : i32
    %c0_i32_0 = arith.constant 0 : i32
    return %arg0, %c0_i32 : i32, i32
  }
  func.func @transform_1(%arg0: i32) -> (i32, i32) {
    %c0_i32 = arith.constant 0 : i32
    %c0_i32_0 = arith.constant 0 : i32
    %c0_i32_1 = arith.constant 0 : i32
    return %c0_i32, %c0_i32_0 : i32, i32
  }
  func.func @transform_2(%arg0: i32) -> (i32, i32) {
    %c0_i32 = arith.constant 0 : i32
    %c0_i32_0 = arith.constant 0 : i32
    %c0_i32_1 = arith.constant 0 : i32
    return %c0_i32, %c0_i32_0 : i32, i32
  }
  func.func @transform_3(%arg0: i32) -> (i32, i32) {
    %c0_i32 = arith.constant 0 : i32
    %c0_i32_0 = arith.constant 0 : i32
    %c0_i32_1 = arith.constant 0 : i32
    return %c0_i32, %c0_i32_0 : i32, i32
  }
  func.func @transform_4(%arg0: i32) -> (i32, i32) {
    %c0_i32 = arith.constant 0 : i32
    %c0_i32_0 = arith.constant 0 : i32
    %c0_i32_1 = arith.constant 0 : i32
    return %c0_i32, %c0_i32_0 : i32, i32
  }
  func.func @transform_5(%arg0: i32) -> (i32, i32) {
    %c0_i32 = arith.constant 0 : i32
    %c0_i32_0 = arith.constant 0 : i32
    %c0_i32_1 = arith.constant 0 : i32
    return %c0_i32, %c0_i32_0 : i32, i32
  }
  func.func @transform_6(%arg0: i32) -> (i32, i32) {
    %c0_i32 = arith.constant 0 : i32
    %c0_i32_0 = arith.constant 0 : i32
    return %arg0, %c0_i32 : i32, i32
  }
}

</mosaic_0001>

<bundles_post_ra>
// kernel: mlp_layout_forward.1
= control target key start
LH: loop header
LB: loop body
LE: loop exit
PB: predicated region body
PF: predicated region fallthrough
CT: control target
= control target key end

     0   :  { %11 = vsyncpa [#allocation3], 0  ;;  %s861_s21 = smov [#allocation2]   ;;  %s1066_s0 = inlined_call_operand.vmem [shape: f32[8,1024], index: 0, kind: input, shape index: {}]   ;;  %s1067_s1 = inlined_call_operand.hbm [shape: f32[1024,256], index: 1, kind: input, shape index: {}]   ;;  %s1068_s2 = inlined_call_operand.vmem [shape: f32[1,256], index: 2, kind: input, shape index: {}]   ;;  %s1069_s3 = inlined_call_operand.vmem [shape: f32[256,64], index: 3, kind: input, shape index: {}]   ;;  %s1070_s4 = inlined_call_operand.vmem [shape: f32[1,64], index: 4, kind: input, shape index: {}]   ;;  %s1071_s5 = inlined_call_operand.vmem [shape: f32[64,4], index: 5, kind: input, shape index: {}]   ;;  %s1072_s6 = inlined_call_operand.vmem [shape: f32[8,4], index: 6, kind: output, shape index: {}]  }
   0x1   :  { %s19_s22 = sshll.u32 %s861_s21, 4  ;;  %s837_s25 = scalar_lea.hbm %s1067_s1, 32768  ;;  %s20_s22 = int_to_ptr.vmem [resolvable:$true] %s19_s22 }
   0x2   :  { %p838_p0 = scmp.ne.s32.totalorder %s1067_s1, %s837_s25  ;;  %p841_p1 = scmp.lt.u32.totalorder %s837_s25, %s1067_s1 }
   0x4   :  { %p843_p2 = pnand %p841_p1, %p838_p0 }
   0x6   :  { %846 = shalt.err (!%p843_p2)
}
   0x7   :  { %s847_s30 = scalar_lea.vmem %s20_s22, 32768  ;;  %p852_p4 = scmp.lt.s32.totalorder %s20_s22, %s20_s22 }
   0x8   :  { %p848_p3 = scmp.ne.s32.totalorder %s20_s22, %s847_s30  ;;  %p853_p5 = scmp.lt.s32.totalorder %s847_s30, %s847_s30 }
   0xa   :  { %p854_p6 = por %p853_p5, %p852_p4 }
   0xc   :  { %p855_p7 = pnand %p854_p6, %p848_p3 }
   0xe   :  { %858 = shalt.err (!%p855_p7)
}
   0xf   :  { %s862_s7 = smov 256   ;;  %s863_s8 = smov 16  }
  0x10   :  { %25 = dma.hbm_to_vmem [thread:$0]  %s1067_s1, 32768, %s20_s22, [#allocation3], %s862_s7, %s862_s7, %s863_s8  }
  0x11   :  { %859 = dma.done.wait [#allocation3], 32768  }
  0x12   :  { %860 = vsyncadd [#allocation3], 4294934528  ;;  %v55_v0 = vld [vmem:[#allocation2 + $0x8] sm:$0xff]  ;;  %v57_v1 = vld [vmem:[#allocation2 + $0x18] sm:$0xff]  ;;  %vm865_vm0 = vmmov 0   ;;  %vm727_vm1 = vcmask 523264  }
  0x13   :  { %v183_v2 = vld [vmem:[#allocation2 + $0x408] sm:$0xff]  ;;  %v311_v3 = vpack.c.bf16 %v57_v1, %v55_v0  ;;  %v185_v4 = vld [vmem:[#allocation2 + $0x418] sm:$0xff]  ;;  %v54_v5 = vld [vmem:[#allocation2] sm:$0xff]  ;;  %vm772_vm2 = vcmask 31744  }
  0x14   :  { %v56_v6 = vld [vmem:[#allocation2 + $0x10] sm:$0xff]  ;;  %v375_v7 = vpack.c.bf16 %v185_v4, %v183_v2  ;;  %v182_v9 = vld [vmem:[#allocation2 + $0x400] sm:$0xff]  ;;  %v59_v11 = vld [vmem:[#allocation2 + $0x28] sm:$0xff] }
  0x15   :  { %v310_v8 = vpack.c.bf16 %v56_v6, %v54_v5  ;;  %v184_v10 = vld [vmem:[#allocation2 + $0x410] sm:$0xff]  ;;  %450 = vmatprep.subr.bf16.mxu1 %v311_v3  ;;  %v61_v13 = vld [vmem:[#allocation2 + $0x38] sm:$0xff]  ;;  %v187_v14 = vld [vmem:[#allocation2 + $0x428] sm:$0xff] }
  0x16   :  { %v374_v12 = vpack.c.bf16 %v184_v10, %v182_v9  ;;  %v189_v15 = vld [vmem:[#allocation2 + $0x438] sm:$0xff]  ;;  %532 = vmatprep.subr.bf16.mxu0 %v375_v7  ;;  %v313_v16 = vpack.c.bf16 %v61_v13, %v59_v11  ;;  %v58_v18 = vld [vmem:[#allocation2 + $0x20] sm:$0xff]  ;;  %v60_v19 = vld [vmem:[#allocation2 + $0x30] sm:$0xff] }
  0x17   :  { %451 = vmatpush1.bf16.msra.mxu1 %v310_v8  ;;  %v377_v17 = vpack.c.bf16 %v189_v15, %v187_v14  ;;  %v186_v20 = vld [vmem:[#allocation2 + $0x420] sm:$0xff]  ;;  %v312_v21 = vpack.c.bf16 %v60_v19, %v58_v18  ;;  %v188_v22 = vld [vmem:[#allocation2 + $0x430] sm:$0xff]  ;;  %v63_v23 = vld [vmem:[#allocation2 + $0x48] sm:$0xff] }
  0x18   :  { %533 = vmatpush1.bf16.msra.mxu0 %v374_v12  ;;  %v65_v24 = vld [vmem:[#allocation2 + $0x58] sm:$0xff]  ;;  %452 = vmatprep.subr.bf16.mxu1 %v313_v16  ;;  %v376_v25 = vpack.c.bf16 %v188_v22, %v186_v20  ;;  %v191_v27 = vld [vmem:[#allocation2 + $0x448] sm:$0xff]  ;;  %v62_v29 = vld [vmem:[#allocation2 + $0x40] sm:$0xff] }
  0x19   :  { %534 = vmatprep.subr.bf16.mxu0 %v377_v17  ;;  %v315_v26 = vpack.c.bf16 %v65_v24, %v63_v23  ;;  %v193_v28 = vld [vmem:[#allocation2 + $0x458] sm:$0xff]  ;;  %v64_v31 = vld [vmem:[#allocation2 + $0x50] sm:$0xff]  ;;  %v190_v32 = vld [vmem:[#allocation2 + $0x440] sm:$0xff] }
  0x1a   :  { %v379_v30 = vpack.c.bf16 %v193_v28, %v191_v27  ;;  %v192_v33 = vld [vmem:[#allocation2 + $0x450] sm:$0xff]  ;;  %v314_v34 = vpack.c.bf16 %v64_v31, %v62_v29  ;;  %v67_v35 = vld [vmem:[#allocation2 + $0x68] sm:$0xff]  ;;  %v69_v36 = vld [vmem:[#allocation2 + $0x78] sm:$0xff] }
  0x1b   :  { %453 = vmatpush1.bf16.msra.mxu1 %v312_v21  ;;  %v195_v37 = vld [vmem:[#allocation2 + $0x468] sm:$0xff]  ;;  %v378_v38 = vpack.c.bf16 %v192_v33, %v190_v32  ;;  %v317_v39 = vpack.c.bf16 %v69_v36, %v67_v35  ;;  %v197_v40 = vld [vmem:[#allocation2 + $0x478] sm:$0xff]  ;;  %v66_v41 = vld [vmem:[#allocation2 + $0x60] sm:$0xff] }
  0x1c   :  { %535 = vmatpush1.bf16.msra.mxu0 %v376_v25  ;;  %454 = vmatprep.subr.bf16.mxu1 %v315_v26  ;;  %v68_v42 = vld [vmem:[#allocation2 + $0x70] sm:$0xff]  ;;  %v381_v43 = vpack.c.bf16 %v197_v40, %v195_v37  ;;  %v194_v44 = vld [vmem:[#allocation2 + $0x460] sm:$0xff]  ;;  %v71_v46 = vld [vmem:[#allocation2 + $0x88] sm:$0xff] }
  0x1d   :  { %536 = vmatprep.subr.bf16.mxu0 %v379_v30  ;;  %v196_v45 = vld [vmem:[#allocation2 + $0x470] sm:$0xff]  ;;  %v73_v47 = vld [vmem:[#allocation2 + $0x98] sm:$0xff]  ;;  %v199_v48 = vld [vmem:[#allocation2 + $0x488] sm:$0xff]  ;;  %v316_v50 = vpack.c.bf16 %v68_v42, %v66_v41 }
  0x1e   :  { %v201_v49 = vld [vmem:[#allocation2 + $0x498] sm:$0xff]  ;;  %v380_v51 = vpack.c.bf16 %v196_v45, %v194_v44  ;;  %v319_v52 = vpack.c.bf16 %v73_v47, %v71_v46  ;;  %v70_v53 = vld [vmem:[#allocation2 + $0x80] sm:$0xff]  ;;  %v72_v54 = vld [vmem:[#allocation2 + $0x90] sm:$0xff] }
  0x1f   :  { %455 = vmatpush1.bf16.msra.mxu1 %v314_v34  ;;  %v198_v55 = vld [vmem:[#allocation2 + $0x480] sm:$0xff]  ;;  %v383_v56 = vpack.c.bf16 %v201_v49, %v199_v48  ;;  %v200_v57 = vld [vmem:[#allocation2 + $0x490] sm:$0xff]  ;;  %v75_v58 = vld [vmem:[#allocation2 + $0xa8] sm:$0xff]  ;;  %v318_v62 = vpack.c.bf16 %v72_v54, %v70_v53 }
  0x20   :  { %537 = vmatpush1.bf16.msra.mxu0 %v378_v38  ;;  %456 = vmatprep.subr.bf16.mxu1 %v317_v39  ;;  %v77_v59 = vld [vmem:[#allocation2 + $0xb8] sm:$0xff]  ;;  %v203_v60 = vld [vmem:[#allocation2 + $0x4a8] sm:$0xff]  ;;  %v382_v63 = vpack.c.bf16 %v200_v57, %v198_v55  ;;  %v74_v1 = vld [vmem:[#allocation2 + $0xa0] sm:$0xff] }
  0x21   :  { %538 = vmatprep.subr.bf16.mxu0 %v381_v43  ;;  %v205_v61 = vld [vmem:[#allocation2 + $0x4b8] sm:$0xff]  ;;  %v321_v0 = vpack.c.bf16 %v77_v59, %v75_v58  ;;  %v76_v2 = vld [vmem:[#allocation2 + $0xb0] sm:$0xff]  ;;  %v202_v3 = vld [vmem:[#allocation2 + $0x4a0] sm:$0xff] }
  0x22   :  { %v385_v4 = vpack.c.bf16 %v205_v61, %v203_v60  ;;  %v204_v5 = vld [vmem:[#allocation2 + $0x4b0] sm:$0xff]  ;;  %v79_v6 = vld [vmem:[#allocation2 + $0xc8] sm:$0xff]  ;;  %v81_v7 = vld [vmem:[#allocation2 + $0xd8] sm:$0xff]  ;;  %v320_v10 = vpack.c.bf16 %v76_v2, %v74_v1 }
  0x23   :  { %457 = vmatpush1.bf16.msra.mxu1 %v316_v50  ;;  %v207_v8 = vld [vmem:[#allocation2 + $0x4c8] sm:$0xff]  ;;  %v209_v9 = vld [vmem:[#allocation2 + $0x4d8] sm:$0xff]  ;;  %v384_v11 = vpack.c.bf16 %v204_v5, %v202_v3  ;;  %v323_v12 = vpack.c.bf16 %v81_v7, %v79_v6  ;;  %v78_v13 = vld [vmem:[#allocation2 + $0xc0] sm:$0xff] }
  0x24   :  { %539 = vmatpush1.bf16.msra.mxu0 %v380_v51  ;;  %458 = vmatprep.subr.bf16.mxu1 %v319_v52  ;;  %v80_v14 = vld [vmem:[#allocation2 + $0xd0] sm:$0xff]  ;;  %v206_v15 = vld [vmem:[#allocation2 + $0x4c0] sm:$0xff]  ;;  %v387_v16 = vpack.c.bf16 %v209_v9, %v207_v8  ;;  %v83_v18 = vld [vmem:[#allocation2 + $0xe8] sm:$0xff] }
  0x25   :  { %540 = vmatprep.subr.bf16.mxu0 %v383_v56  ;;  %v208_v17 = vld [vmem:[#allocation2 + $0x4d0] sm:$0xff]  ;;  %v85_v19 = vld [vmem:[#allocation2 + $0xf8] sm:$0xff]  ;;  %v211_v20 = vld [vmem:[#allocation2 + $0x4e8] sm:$0xff]  ;;  %v322_v22 = vpack.c.bf16 %v80_v14, %v78_v13 }
  0x26   :  { %v213_v21 = vld [vmem:[#allocation2 + $0x4f8] sm:$0xff]  ;;  %v386_v23 = vpack.c.bf16 %v208_v17, %v206_v15  ;;  %v325_v24 = vpack.c.bf16 %v85_v19, %v83_v18  ;;  %v82_v25 = vld [vmem:[#allocation2 + $0xe0] sm:$0xff]  ;;  %v84_v26 = vld [vmem:[#allocation2 + $0xf0] sm:$0xff] }
  0x27   :  { %459 = vmatpush1.bf16.msra.mxu1 %v318_v62  ;;  %v210_v27 = vld [vmem:[#allocation2 + $0x4e0] sm:$0xff]  ;;  %v389_v28 = vpack.c.bf16 %v213_v21, %v211_v20  ;;  %v212_v29 = vld [vmem:[#allocation2 + $0x4f0] sm:$0xff]  ;;  %v87_v30 = vld [vmem:[#allocation2 + $0x108] sm:$0xff]  ;;  %v324_v34 = vpack.c.bf16 %v84_v26, %v82_v25 }
  0x28   :  { %541 = vmatpush1.bf16.msra.mxu0 %v382_v63  ;;  %460 = vmatprep.subr.bf16.mxu1 %v321_v0  ;;  %v89_v31 = vld [vmem:[#allocation2 + $0x118] sm:$0xff]  ;;  %v215_v32 = vld [vmem:[#allocation2 + $0x508] sm:$0xff]  ;;  %v388_v35 = vpack.c.bf16 %v212_v29, %v210_v27  ;;  %v86_v37 = vld [vmem:[#allocation2 + $0x100] sm:$0xff] }
  0x29   :  { %542 = vmatprep.subr.bf16.mxu0 %v385_v4  ;;  %v217_v33 = vld [vmem:[#allocation2 + $0x518] sm:$0xff]  ;;  %v327_v36 = vpack.c.bf16 %v89_v31, %v87_v30  ;;  %v88_v38 = vld [vmem:[#allocation2 + $0x110] sm:$0xff]  ;;  %v214_v39 = vld [vmem:[#allocation2 + $0x500] sm:$0xff] }
  0x2a   :  { %v391_v40 = vpack.c.bf16 %v217_v33, %v215_v32  ;;  %v216_v41 = vld [vmem:[#allocation2 + $0x510] sm:$0xff]  ;;  %v91_v42 = vld [vmem:[#allocation2 + $0x128] sm:$0xff]  ;;  %v93_v43 = vld [vmem:[#allocation2 + $0x138] sm:$0xff]  ;;  %v326_v46 = vpack.c.bf16 %v88_v38, %v86_v37 }
  0x2b   :  { %461 = vmatpush1.bf16.msra.mxu1 %v320_v10  ;;  %v219_v44 = vld [vmem:[#allocation2 + $0x528] sm:$0xff]  ;;  %v221_v45 = vld [vmem:[#allocation2 + $0x538] sm:$0xff]  ;;  %v390_v47 = vpack.c.bf16 %v216_v41, %v214_v39  ;;  %v329_v48 = vpack.c.bf16 %v93_v43, %v91_v42  ;;  %v90_v49 = vld [vmem:[#allocation2 + $0x120] sm:$0xff] }
  0x2c   :  { %543 = vmatpush1.bf16.msra.mxu0 %v384_v11  ;;  %462 = vmatprep.subr.bf16.mxu1 %v323_v12  ;;  %v92_v50 = vld [vmem:[#allocation2 + $0x130] sm:$0xff]  ;;  %v218_v51 = vld [vmem:[#allocation2 + $0x520] sm:$0xff]  ;;  %v393_v52 = vpack.c.bf16 %v221_v45, %v219_v44  ;;  %v95_v54 = vld [vmem:[#allocation2 + $0x148] sm:$0xff] }
  0x2d   :  { %544 = vmatprep.subr.bf16.mxu0 %v387_v16  ;;  %v220_v53 = vld [vmem:[#allocation2 + $0x530] sm:$0xff]  ;;  %v97_v55 = vld [vmem:[#allocation2 + $0x158] sm:$0xff]  ;;  %v223_v56 = vld [vmem:[#allocation2 + $0x548] sm:$0xff]  ;;  %v328_v58 = vpack.c.bf16 %v92_v50, %v90_v49 }
  0x2e   :  { %v225_v57 = vld [vmem:[#allocation2 + $0x558] sm:$0xff]  ;;  %v392_v59 = vpack.c.bf16 %v220_v53, %v218_v51  ;;  %v331_v60 = vpack.c.bf16 %v97_v55, %v95_v54  ;;  %v94_v61 = vld [vmem:[#allocation2 + $0x140] sm:$0xff]  ;;  %v96_v62 = vld [vmem:[#allocation2 + $0x150] sm:$0xff] }
  0x2f   :  { %463 = vmatpush1.bf16.msra.mxu1 %v322_v22  ;;  %v222_v63 = vld [vmem:[#allocation2 + $0x540] sm:$0xff]  ;;  %v395_v0 = vpack.c.bf16 %v225_v57, %v223_v56  ;;  %v224_v1 = vld [vmem:[#allocation2 + $0x550] sm:$0xff]  ;;  %v99_v2 = vld [vmem:[#allocation2 + $0x168] sm:$0xff]  ;;  %v330_v6 = vpack.c.bf16 %v96_v62, %v94_v61 }
  0x30   :  { %545 = vmatpush1.bf16.msra.mxu0 %v386_v23  ;;  %464 = vmatprep.subr.bf16.mxu1 %v325_v24  ;;  %v101_v3 = vld [vmem:[#allocation2 + $0x178] sm:$0xff]  ;;  %v227_v4 = vld [vmem:[#allocation2 + $0x568] sm:$0xff]  ;;  %v98_v7 = vld [vmem:[#allocation2 + $0x160] sm:$0xff]  ;;  %v394_v8 = vpack.c.bf16 %v224_v1, %v222_v63 }
  0x31   :  { %546 = vmatprep.subr.bf16.mxu0 %v389_v28  ;;  %v229_v5 = vld [vmem:[#allocation2 + $0x578] sm:$0xff]  ;;  %v333_v9 = vpack.c.bf16 %v101_v3, %v99_v2  ;;  %v100_v10 = vld [vmem:[#allocation2 + $0x170] sm:$0xff]  ;;  %v226_v11 = vld [vmem:[#allocation2 + $0x560] sm:$0xff] }
  0x32   :  { %v228_v12 = vld [vmem:[#allocation2 + $0x570] sm:$0xff]  ;;  %v397_v13 = vpack.c.bf16 %v229_v5, %v227_v4  ;;  %v103_v14 = vld [vmem:[#allocation2 + $0x188] sm:$0xff]  ;;  %v105_v15 = vld [vmem:[#allocation2 + $0x198] sm:$0xff]  ;;  %v332_v21 = vpack.c.bf16 %v100_v10, %v98_v7 }
  0x33   :  { %465 = vmatpush1.bf16.msra.mxu1 %v324_v34  ;;  %v39_v16 = vld [vmem:[%s1066_s0 + $0x8] sm:$0xff]  ;;  %v233_v18 = vld [vmem:[#allocation2 + $0x598] sm:$0xff]  ;;  %v396_v23 = vpack.c.bf16 %v228_v12, %v226_v11  ;;  %v335_v24 = vpack.c.bf16 %v105_v15, %v103_v14  ;;  %v102_v25 = vld [vmem:[#allocation2 + $0x180] sm:$0xff] }
  0x34   :  { %547 = vmatpush1.bf16.msra.mxu0 %v388_v35  ;;  %466 = vmatprep.subr.bf16.mxu1 %v327_v36  ;;  %v231_v17 = vld [vmem:[#allocation2 + $0x588] sm:$0xff]  ;;  %v47_v19 = vpack.c.bf16 %v39_v16, %v39_v16  ;;  %v104_v26 = vld [vmem:[#allocation2 + $0x190] sm:$0xff]  ;;  %v230_v27 = vld [vmem:[#allocation2 + $0x580] sm:$0xff] }
  0x35   :  { %548 = vmatprep.subr.bf16.mxu0 %v391_v40  ;;  %v43_v20 = vld [vmem:[%s1066_s0 + $0x28] sm:$0xff]  ;;  %v399_v28 = vpack.c.bf16 %v233_v18, %v231_v17  ;;  %v232_v29 = vld [vmem:[#allocation2 + $0x590] sm:$0xff]  ;;  %v109_v31 = vld [vmem:[#allocation2 + $0x1b8] sm:$0xff]  ;;  %v334_v34 = vpack.c.bf16 %v104_v26, %v102_v25 }
  0x36   :  { %v51_v22 = vpack.c.bf16 %v43_v20, %v43_v20  ;;  %v107_v30 = vld [vmem:[#allocation2 + $0x1a8] sm:$0xff]  ;;  %482 = vmatprep.mubr.bf16.mxu1 %v47_v19  ;;  %v237_v33 = vld [vmem:[#allocation2 + $0x5b8] sm:$0xff]  ;;  %v398_v35 = vpack.c.bf16 %v232_v29, %v230_v27  ;;  %v106_v37 = vld [vmem:[#allocation2 + $0x1a0] sm:$0xff] }
  0x37   :  { %467 = vmatpush1.bf16.msra.mxu1 %v326_v46  ;;  %v235_v32 = vld [vmem:[#allocation2 + $0x5a8] sm:$0xff]  ;;  %v337_v36 = vpack.c.bf16 %v109_v31, %v107_v30  ;;  %v108_v38 = vld [vmem:[#allocation2 + $0x1b0] sm:$0xff]  ;;  %v234_v39 = vld [vmem:[#allocation2 + $0x5a0] sm:$0xff] }
  0x38   :  { %549 = vmatpush1.bf16.msra.mxu0 %v390_v47  ;;  %468 = vmatprep.subr.bf16.mxu1 %v329_v48  ;;  %v401_v40 = vpack.c.bf16 %v237_v33, %v235_v32  ;;  %v236_v41 = vld [vmem:[#allocation2 + $0x5b0] sm:$0xff]  ;;  %v111_v42 = vld [vmem:[#allocation2 + $0x1c8] sm:$0xff]  ;;  %v113_v43 = vld [vmem:[#allocation2 + $0x1d8] sm:$0xff]  ;;  %v336_v46 = vpack.c.bf16 %v108_v38, %v106_v37 }
  0x39   :  { %550 = vmatprep.subr.bf16.mxu0 %v393_v52  ;;  %564 = vmatprep.mubr.bf16.mxu0 %v51_v22  ;;  %v239_v44 = vld [vmem:[#allocation2 + $0x5c8] sm:$0xff]  ;;  %v241_v45 = vld [vmem:[#allocation2 + $0x5d8] sm:$0xff]  ;;  %v400_v47 = vpack.c.bf16 %v236_v41, %v234_v39  ;;  %v339_v48 = vpack.c.bf16 %v113_v43, %v111_v42  ;;  %v110_v49 = vld [vmem:[#allocation2 + $0x1c0] sm:$0xff] }
  0x3a   :  { %v112_v50 = vld [vmem:[#allocation2 + $0x1d0] sm:$0xff]  ;;  %v238_v51 = vld [vmem:[#allocation2 + $0x5c0] sm:$0xff]  ;;  %v403_v52 = vpack.c.bf16 %v241_v45, %v239_v44  ;;  %v115_v54 = vld [vmem:[#allocation2 + $0x1e8] sm:$0xff] }
  0x3b   :  { %469 = vmatpush1.bf16.msra.mxu1 %v328_v58  ;;  %v240_v53 = vld [vmem:[#allocation2 + $0x5d0] sm:$0xff]  ;;  %v117_v55 = vld [vmem:[#allocation2 + $0x1f8] sm:$0xff]  ;;  %v243_v56 = vld [vmem:[#allocation2 + $0x5e8] sm:$0xff]  ;;  %v338_v58 = vpack.c.bf16 %v112_v50, %v110_v49 }
  0x3c   :  { %551 = vmatpush1.bf16.msra.mxu0 %v392_v59  ;;  %470 = vmatprep.subr.bf16.mxu1 %v331_v60  ;;  %v245_v57 = vld [vmem:[#allocation2 + $0x5f8] sm:$0xff]  ;;  %v402_v59 = vpack.c.bf16 %v240_v53, %v238_v51  ;;  %v341_v60 = vpack.c.bf16 %v117_v55, %v115_v54  ;;  %v114_v61 = vld [vmem:[#allocation2 + $0x1e0] sm:$0xff]  ;;  %v116_v62 = vld [vmem:[#allocation2 + $0x1f0] sm:$0xff] }
  0x3d   :  { %552 = vmatprep.subr.bf16.mxu0 %v395_v0  ;;  %v242_v63 = vld [vmem:[#allocation2 + $0x5e0] sm:$0xff]  ;;  %v405_v0 = vpack.c.bf16 %v245_v57, %v243_v56  ;;  %v244_v1 = vld [vmem:[#allocation2 + $0x5f0] sm:$0xff]  ;;  %v119_v2 = vld [vmem:[#allocation2 + $0x208] sm:$0xff] }
  0x3e   :  { %v121_v3 = vld [vmem:[#allocation2 + $0x218] sm:$0xff]  ;;  %v247_v4 = vld [vmem:[#allocation2 + $0x608] sm:$0xff]  ;;  %v38_v7 = vld [vmem:[%s1066_s0] sm:$0xff] }
  0x3f   :  { %471 = vmatpush1.bf16.msra.mxu1 %v330_v6  ;;  %v249_v5 = vld [vmem:[#allocation2 + $0x618] sm:$0xff]  ;;  %v340_v6 = vpack.c.bf16 %v116_v62, %v114_v61  ;;  %v343_v10 = vpack.c.bf16 %v121_v3, %v119_v2  ;;  %v120_v11 = vld [vmem:[#allocation2 + $0x210] sm:$0xff]  ;;  %v42_v12 = vld [vmem:[%s1066_s0 + $0x20] sm:$0xff]  ;;  %v46_v18 = vpack.c.bf16 %v38_v7, %v38_v7 }
  0x40   :  { %553 = vmatpush1.bf16.msra.mxu0 %v394_v8  ;;  %472 = vmatprep.subr.bf16.mxu1 %v333_v9  ;;  %v118_v8 = vld [vmem:[#allocation2 + $0x200] sm:$0xff]  ;;  %v404_v9 = vpack.c.bf16 %v244_v1, %v242_v63  ;;  %v407_v14 = vpack.c.bf16 %v249_v5, %v247_v4  ;;  %v248_v15 = vld [vmem:[#allocation2 + $0x610] sm:$0xff]  ;;  %v123_v16 = vld [vmem:[#allocation2 + $0x228] sm:$0xff]  ;;  %v50_v22 = vpack.c.bf16 %v42_v12, %v42_v12 }
  0x41   :  { %554 = vmatprep.subr.bf16.mxu0 %v397_v13  ;;  %v246_v13 = vld [vmem:[#allocation2 + $0x600] sm:$0xff]  ;;  %v125_v17 = vld [vmem:[#allocation2 + $0x238] sm:$0xff]  ;;  %v251_v19 = vld [vmem:[#allocation2 + $0x628] sm:$0xff] }
  0x42   :  { %v253_v20 = vld [vmem:[#allocation2 + $0x638] sm:$0xff]  ;;  %v122_v25 = vld [vmem:[#allocation2 + $0x220] sm:$0xff]  ;;  %v124_v26 = vld [vmem:[#allocation2 + $0x230] sm:$0xff] }
  0x43   :  { %473 = vmatpush1.bf16.msra.mxu1 %v332_v21  ;;  %v342_v21 = vpack.c.bf16 %v120_v11, %v118_v8  ;;  %v250_v27 = vld [vmem:[#allocation2 + $0x620] sm:$0xff]  ;;  %v252_v29 = vld [vmem:[#allocation2 + $0x630] sm:$0xff]  ;;  %v127_v30 = vld [vmem:[#allocation2 + $0x248] sm:$0xff] }
  0x44   :  { %555 = vmatpush1.bf16.msra.mxu0 %v396_v23  ;;  %474 = vmatprep.subr.bf16.mxu1 %v335_v24  ;;  %v406_v23 = vpack.c.bf16 %v248_v15, %v246_v13  ;;  %v345_v24 = vpack.c.bf16 %v125_v17, %v123_v16  ;;  %v129_v31 = vld [vmem:[#allocation2 + $0x258] sm:$0xff]  ;;  %v255_v32 = vld [vmem:[#allocation2 + $0x648] sm:$0xff]  ;;  %v126_v37 = vld [vmem:[#allocation2 + $0x240] sm:$0xff] }
  0x45   :  { %556 = vmatprep.subr.bf16.mxu0 %v399_v28  ;;  %v409_v28 = vpack.c.bf16 %v253_v20, %v251_v19  ;;  %v257_v33 = vld [vmem:[#allocation2 + $0x658] sm:$0xff]  ;;  %v128_v38 = vld [vmem:[#allocation2 + $0x250] sm:$0xff]  ;;  %v254_v39 = vld [vmem:[#allocation2 + $0x640] sm:$0xff] }
  0x46   :  { %v256_v41 = vld [vmem:[#allocation2 + $0x650] sm:$0xff]  ;;  %v131_v42 = vld [vmem:[#allocation2 + $0x268] sm:$0xff]  ;;  %v133_v43 = vld [vmem:[#allocation2 + $0x278] sm:$0xff] }
  0x47   :  { %475 = vmatpush1.bf16.msra.mxu1 %v334_v34  ;;  %v344_v34 = vpack.c.bf16 %v124_v26, %v122_v25  ;;  %v259_v44 = vld [vmem:[#allocation2 + $0x668] sm:$0xff]  ;;  %v261_v45 = vld [vmem:[#allocation2 + $0x678] sm:$0xff]  ;;  %v130_v49 = vld [vmem:[#allocation2 + $0x260] sm:$0xff] }
  0x48   :  { %557 = vmatpush1.bf16.msra.mxu0 %v398_v35  ;;  %476 = vmatprep.subr.bf16.mxu1 %v337_v36  ;;  %v408_v35 = vpack.c.bf16 %v252_v29, %v250_v27  ;;  %v347_v36 = vpack.c.bf16 %v129_v31, %v127_v30  ;;  %v132_v50 = vld [vmem:[#allocation2 + $0x270] sm:$0xff]  ;;  %v258_v51 = vld [vmem:[#allocation2 + $0x660] sm:$0xff]  ;;  %v135_v54 = vld [vmem:[#allocation2 + $0x288] sm:$0xff] }
  0x49   :  { %558 = vmatprep.subr.bf16.mxu0 %v401_v40  ;;  %v411_v40 = vpack.c.bf16 %v257_v33, %v255_v32  ;;  %v260_v53 = vld [vmem:[#allocation2 + $0x670] sm:$0xff]  ;;  %v137_v55 = vld [vmem:[#allocation2 + $0x298] sm:$0xff]  ;;  %v263_v56 = vld [vmem:[#allocation2 + $0x688] sm:$0xff] }
  0x4a   :  { %v265_v57 = vld [vmem:[#allocation2 + $0x698] sm:$0xff]  ;;  %v134_v61 = vld [vmem:[#allocation2 + $0x280] sm:$0xff]  ;;  %v136_v62 = vld [vmem:[#allocation2 + $0x290] sm:$0xff] }
  0x4b   :  { %477 = vmatpush1.bf16.msra.mxu1 %v336_v46  ;;  %v346_v46 = vpack.c.bf16 %v128_v38, %v126_v37  ;;  %v262_v63 = vld [vmem:[#allocation2 + $0x680] sm:$0xff]  ;;  %v264_v1 = vld [vmem:[#allocation2 + $0x690] sm:$0xff]  ;;  %v139_v2 = vld [vmem:[#allocation2 + $0x2a8] sm:$0xff] }
  0x4c   :  { %559 = vmatpush1.bf16.msra.mxu0 %v400_v47  ;;  %478 = vmatprep.subr.bf16.mxu1 %v339_v48  ;;  %v410_v47 = vpack.c.bf16 %v256_v41, %v254_v39  ;;  %v349_v48 = vpack.c.bf16 %v133_v43, %v131_v42  ;;  %v141_v3 = vld [vmem:[#allocation2 + $0x2b8] sm:$0xff]  ;;  %v267_v4 = vld [vmem:[#allocation2 + $0x6a8] sm:$0xff]  ;;  %v414_v7 = vpack.c.bf16 %v264_v1, %v262_v63  ;;  %v266_v11 = vld [vmem:[#allocation2 + $0x6a0] sm:$0xff] }
  0x4d   :  { %560 = vmatprep.subr.bf16.mxu0 %v403_v52  ;;  %v413_v52 = vpack.c.bf16 %v261_v45, %v259_v44  ;;  %v269_v5 = vld [vmem:[#allocation2 + $0x6b8] sm:$0xff]  ;;  %v353_v8 = vpack.c.bf16 %v141_v3, %v139_v2  ;;  %v268_v13 = vld [vmem:[#allocation2 + $0x6b0] sm:$0xff]  ;;  %v271_v16 = vld [vmem:[#allocation2 + $0x6c8] sm:$0xff] }
  0x4e   :  { %v417_v12 = vpack.c.bf16 %v269_v5, %v267_v4  ;;  %v145_v15 = vld [vmem:[#allocation2 + $0x2d8] sm:$0xff]  ;;  %v142_v19 = vld [vmem:[#allocation2 + $0x2c0] sm:$0xff]  ;;  %v416_v20 = vpack.c.bf16 %v268_v13, %v266_v11  ;;  %v147_v26 = vld [vmem:[#allocation2 + $0x2e8] sm:$0xff] }
  0x4f   :  { %479 = vmatpush1.bf16.msra.mxu1 %v338_v58  ;;  %v348_v58 = vpack.c.bf16 %v132_v50, %v130_v49  ;;  %v273_v17 = vld [vmem:[#allocation2 + $0x6d8] sm:$0xff]  ;;  %v275_v29 = vld [vmem:[#allocation2 + $0x6e8] sm:$0xff]  ;;  %v146_v37 = vld [vmem:[#allocation2 + $0x2e0] sm:$0xff] }
  0x50   :  { %561 = vmatpush1.bf16.msra.mxu0 %v402_v59  ;;  %480 = vmatprep.subr.bf16.mxu1 %v341_v60  ;;  %v412_v59 = vpack.c.bf16 %v260_v53, %v258_v51  ;;  %v351_v60 = vpack.c.bf16 %v137_v55, %v135_v54  ;;  %v419_v25 = vpack.c.bf16 %v273_v17, %v271_v16  ;;  %v149_v27 = vld [vmem:[#allocation2 + $0x2f8] sm:$0xff]  ;;  %v148_v38 = vld [vmem:[#allocation2 + $0x2f0] sm:$0xff]  ;;  %v274_v39 = vld [vmem:[#allocation2 + $0x6e0] sm:$0xff] }
  0x51   :  { %562 = vmatprep.subr.bf16.mxu0 %v405_v0  ;;  %v415_v0 = vpack.c.bf16 %v265_v57, %v263_v56  ;;  %v277_v30 = vld [vmem:[#allocation2 + $0x6f8] sm:$0xff]  ;;  %v276_v41 = vld [vmem:[#allocation2 + $0x6f0] sm:$0xff]  ;;  %v151_v42 = vld [vmem:[#allocation2 + $0x308] sm:$0xff] }
  0x52   :  { %v45_v32 = vld [vmem:[%s1066_s0 + $0x38] sm:$0xff]  ;;  %v279_v44 = vld [vmem:[#allocation2 + $0x708] sm:$0xff]  ;;  %v150_v49 = vld [vmem:[#allocation2 + $0x300] sm:$0xff] }
  0x53   :  { %481 = vmatpush1.bf16.msra.mxu1 %v340_v6  ;;  %v350_v6 = vpack.c.bf16 %v136_v62, %v134_v61  ;;  %v153_v43 = vld [vmem:[#allocation2 + $0x318] sm:$0xff]  ;;  %v152_v50 = vld [vmem:[#allocation2 + $0x310] sm:$0xff]  ;;  %v278_v51 = vld [vmem:[#allocation2 + $0x700] sm:$0xff] }
  0x54   :  { %563 = vmatpush1.bf16.msra.mxu0 %v404_v9  ;;  %491 = vmatprep.subr.bf16.mxu1 %v343_v10  ;;  %v138_v9 = vld [vmem:[#allocation2 + $0x2a0] sm:$0xff]  ;;  %v140_v10 = vld [vmem:[#allocation2 + $0x2b0] sm:$0xff]  ;;  %v281_v45 = vld [vmem:[#allocation2 + $0x718] sm:$0xff] }
  0x55   :  { %573 = vmatprep.subr.bf16.mxu0 %v407_v14  ;;  %v143_v14 = vld [vmem:[#allocation2 + $0x2c8] sm:$0xff]  ;;  %v280_v53 = vld [vmem:[#allocation2 + $0x710] sm:$0xff]  ;;  %v157_v55 = vld [vmem:[#allocation2 + $0x338] sm:$0xff] }
  0x56   :  { %483 = vmatmul.mubr.bf16.vlgmr.msra.gmra.mrb[0].mxu1 %v46_v18  ;;  %v352_v18 = vpack.c.bf16 %v140_v10, %v138_v9  ;;  %v155_v54 = vld [vmem:[#allocation2 + $0x328] sm:$0xff]  ;;  %v285_v57 = vld [vmem:[#allocation2 + $0x738] sm:$0xff]  ;;  %v154_v61 = vld [vmem:[#allocation2 + $0x320] sm:$0xff] }
  0x57   :  { %492 = vmatpush1.bf16.msra.mxu1 %v342_v21  ;;  %565 = vmatmul.mubr.bf16.vlgmr.msra.gmra.mrb[0].mxu0 %v50_v22  ;;  %v355_v21 = vpack.c.bf16 %v145_v15, %v143_v14  ;;  %v144_v22 = vld [vmem:[#allocation2 + $0x2d0] sm:$0xff]  ;;  %v283_v56 = vld [vmem:[#allocation2 + $0x728] sm:$0xff]  ;;  %v282_v63 = vld [vmem:[#allocation2 + $0x720] sm:$0xff] }
  0x58   :  { %574 = vmatpush1.bf16.msra.mxu0 %v406_v23  ;;  %493 = vmatprep.subr.bf16.mxu1 %v345_v24  ;;  %v270_v23 = vld [vmem:[#allocation2 + $0x6c0] sm:$0xff]  ;;  %v272_v24 = vld [vmem:[#allocation2 + $0x6d0] sm:$0xff]  ;;  %v354_v33 = vpack.c.bf16 %v144_v22, %v142_v19  ;;  %v159_v2 = vld [vmem:[#allocation2 + $0x348] sm:$0xff] }
  0x59   :  { %575 = vmatprep.subr.bf16.mxu0 %v409_v28  ;;  %v41_v28 = vld [vmem:[%s1066_s0 + $0x18] sm:$0xff]  ;;  %v156_v62 = vld [vmem:[#allocation2 + $0x330] sm:$0xff]  ;;  %v287_v4 = vld [vmem:[#allocation2 + $0x748] sm:$0xff] }
  0x5a   :  { %v49_v31 = vpack.c.bf16 %v41_v28, %v41_v28  ;;  %v284_v1 = vld [vmem:[#allocation2 + $0x730] sm:$0xff]  ;;  %v161_v3 = vld [vmem:[#allocation2 + $0x358] sm:$0xff]  ;;  %v158_v9 = vld [vmem:[#allocation2 + $0x340] sm:$0xff] }
  0x5b   :  { %494 = vmatpush1.bf16.msra.mxu1 %v344_v34  ;;  %v53_v34 = vpack.c.bf16 %v45_v32, %v45_v32  ;;  %v289_v5 = vld [vmem:[#allocation2 + $0x758] sm:$0xff]  ;;  %v160_v10 = vld [vmem:[#allocation2 + $0x350] sm:$0xff]  ;;  %v286_v11 = vld [vmem:[#allocation2 + $0x740] sm:$0xff] }
  0x5c   :  { %576 = vmatpush1.bf16.msra.mxu0 %v408_v35  ;;  %495 = vmatprep.subr.bf16.mxu1 %v347_v36  ;;  %v418_v35 = vpack.c.bf16 %v272_v24, %v270_v23  ;;  %v357_v36 = vpack.c.bf16 %v149_v27, %v147_v26  ;;  %v288_v13 = vld [vmem:[#allocation2 + $0x750] sm:$0xff]  ;;  %v163_v14 = vld [vmem:[#allocation2 + $0x368] sm:$0xff]  ;;  %v165_v15 = vld [vmem:[#allocation2 + $0x378] sm:$0xff] }
  0x5d   :  { %577 = vmatprep.subr.bf16.mxu0 %v411_v40  ;;  %v421_v40 = vpack.c.bf16 %v277_v30, %v275_v29  ;;  %523 = vmatprep.mubr.bf16.mxu1 %v49_v31  ;;  %v291_v16 = vld [vmem:[#allocation2 + $0x768] sm:$0xff]  ;;  %v293_v17 = vld [vmem:[#allocation2 + $0x778] sm:$0xff]  ;;  %v426_v19 = vpack.c.bf16 %v288_v13, %v286_v11  ;;  %v164_v22 = vld [vmem:[#allocation2 + $0x370] sm:$0xff] }
  0x5e   :  { %605 = vmatprep.mubr.bf16.mxu0 %v53_v34  ;;  %v290_v23 = vld [vmem:[#allocation2 + $0x760] sm:$0xff]  ;;  %v429_v24 = vpack.c.bf16 %v293_v17, %v291_v16  ;;  %v167_v26 = vld [vmem:[#allocation2 + $0x388] sm:$0xff]  ;;  %v169_v27 = vld [vmem:[#allocation2 + $0x398] sm:$0xff] }
  0x5f   :  { %496 = vmatpush1.bf16.msra.mxu1 %v346_v46  ;;  %v356_v46 = vpack.c.bf16 %v148_v38, %v146_v37  ;;  %v295_v28 = vld [vmem:[#allocation2 + $0x788] sm:$0xff]  ;;  %v297_v29 = vld [vmem:[#allocation2 + $0x798] sm:$0xff]  ;;  %v367_v32 = vpack.c.bf16 %v169_v27, %v167_v26  ;;  %v168_v34 = vld [vmem:[#allocation2 + $0x390] sm:$0xff] }
  0x60   :  { %578 = vmatpush1.bf16.msra.mxu0 %v410_v47  ;;  %497 = vmatprep.subr.bf16.mxu1 %v349_v48  ;;  %v420_v47 = vpack.c.bf16 %v276_v41, %v274_v39  ;;  %v359_v48 = vpack.c.bf16 %v153_v43, %v151_v42  ;;  %v296_v37 = vld [vmem:[#allocation2 + $0x790] sm:$0xff]  ;;  %v171_v38 = vld [vmem:[#allocation2 + $0x3a8] sm:$0xff]  ;;  %v173_v39 = vld [vmem:[#allocation2 + $0x3b8] sm:$0xff] }
  0x61   :  { %579 = vmatprep.subr.bf16.mxu0 %v413_v52  ;;  %v423_v52 = vpack.c.bf16 %v281_v45, %v279_v44  ;;  %v301_v41 = vld [vmem:[#allocation2 + $0x7b8] sm:$0xff]  ;;  %v369_v44 = vpack.c.bf16 %v173_v39, %v171_v38  ;;  %v170_v45 = vld [vmem:[#allocation2 + $0x3a0] sm:$0xff]  ;;  %v635_v11 = vld [vmem:[%s1069_s3 + $0x88] sm:$0xff] }
  0x62   :  { %v40_v13 = vld [vmem:[%s1066_s0 + $0x10] sm:$0xff]  ;;  %v618_v17 = vld [vmem:[%s1069_s3] sm:$0xff]  ;;  %v621_v26 = vld [vmem:[%s1069_s3 + $0x18] sm:$0xff] }
  0x63   :  { %498 = vmatpush1.bf16.msra.mxu1 %v348_v58  ;;  %v358_v58 = vpack.c.bf16 %v152_v50, %v150_v49  ;;  %v300_v49 = vld [vmem:[#allocation2 + $0x7b0] sm:$0xff]  ;;  %v175_v50 = vld [vmem:[#allocation2 + $0x3c8] sm:$0xff]  ;;  %v638_v27 = vld [vmem:[%s1069_s3 + $0xa0] sm:$0xff] }
  0x64   :  { %580 = vmatpush1.bf16.msra.mxu0 %v412_v59  ;;  %499 = vmatprep.subr.bf16.mxu1 %v351_v60  ;;  %v422_v59 = vpack.c.bf16 %v280_v53, %v278_v51  ;;  %v361_v60 = vpack.c.bf16 %v157_v55, %v155_v54  ;;  %v177_v51 = vld [vmem:[#allocation2 + $0x3d8] sm:$0xff]  ;;  %v642_v39 = vld [vmem:[%s1069_s3 + $0xc0] sm:$0xff] }
  0x65   :  { %581 = vmatprep.subr.bf16.mxu0 %v415_v0  ;;  %v425_v0 = vpack.c.bf16 %v285_v57, %v283_v56  ;;  %v305_v53 = vld [vmem:[#allocation2 + $0x7d8] sm:$0xff]  ;;  %v371_v56 = vpack.c.bf16 %v177_v51, %v175_v50  ;;  %v174_v57 = vld [vmem:[#allocation2 + $0x3c0] sm:$0xff] }
  0x66   :  { %v625_v38 = vld [vmem:[%s1069_s3 + $0x38] sm:$0xff] }
  0x67   :  { %500 = vmatpush1.bf16.msra.mxu1 %v350_v6  ;;  %v360_v6 = vpack.c.bf16 %v156_v62, %v154_v61  ;;  %v304_v61 = vld [vmem:[#allocation2 + $0x7d0] sm:$0xff]  ;;  %v179_v62 = vld [vmem:[#allocation2 + $0x3e8] sm:$0xff]  ;;  %v629_v50 = vld [vmem:[%s1069_s3 + $0x58] sm:$0xff] }
  0x68   :  { %582 = vmatpush1.bf16.msra.mxu0 %v414_v7  ;;  %501 = vmatprep.subr.bf16.mxu1 %v353_v8  ;;  %v424_v7 = vpack.c.bf16 %v284_v1, %v282_v63  ;;  %v363_v8 = vpack.c.bf16 %v161_v3, %v159_v2  ;;  %v181_v63 = vld [vmem:[#allocation2 + $0x3f8] sm:$0xff] }
  0x69   :  { %583 = vmatprep.subr.bf16.mxu0 %v417_v12  ;;  %v427_v12 = vpack.c.bf16 %v289_v5, %v287_v4  ;;  %v309_v1 = vld [vmem:[#allocation2 + $0x7f8] sm:$0xff]  ;;  %v373_v4 = vpack.c.bf16 %v181_v63, %v179_v62  ;;  %v178_v5 = vld [vmem:[#allocation2 + $0x3e0] sm:$0xff] }
  0x6a   :  { %v633_v62 = vld [vmem:[%s1069_s3 + $0x78] sm:$0xff] }
  0x6b   :  { %502 = vmatpush1.bf16.msra.mxu1 %v352_v18  ;;  %v362_v18 = vpack.c.bf16 %v160_v10, %v158_v9  ;;  %v308_v9 = vld [vmem:[#allocation2 + $0x7f0] sm:$0xff]  ;;  %v634_v10 = vld [vmem:[%s1069_s3 + $0x80] sm:$0xff] }
  0x6c   :  { %584 = vmatpush1.bf16.msra.mxu0 %v416_v20  ;;  %503 = vmatprep.subr.bf16.mxu1 %v355_v21  ;;  %v365_v20 = vpack.c.bf16 %v165_v15, %v163_v14  ;;  %v162_v21 = vld [vmem:[#allocation2 + $0x360] sm:$0xff]  ;;  %v44_v15 = vld [vmem:[%s1066_s0 + $0x30] sm:$0xff]  ;;  %v658_v16 = vpack.c.bf16 %v635_v11, %v634_v10 }
  0x6d   :  { %585 = vmatprep.subr.bf16.mxu0 %v419_v25  ;;  %v292_v25 = vld [vmem:[#allocation2 + $0x770] sm:$0xff]  ;;  %v364_v30 = vpack.c.bf16 %v164_v22, %v162_v21  ;;  %v637_v21 = vld [vmem:[%s1069_s3 + $0x98] sm:$0xff]  ;;  %v52_v22 = vpack.c.bf16 %v44_v15, %v44_v15  ;;  %v438_v10 = vld [vmem:[%s1068_s2] sm:$0x3] }
  0x6e   :  { %v428_v31 = vpack.c.bf16 %v292_v25, %v290_v23  ;;  %v620_v25 = vld [vmem:[%s1069_s3 + $0x10] sm:$0xff] }
  0x6f   :  { %504 = vmatpush1.bf16.msra.mxu1 %v354_v33  ;;  %v166_v33 = vld [vmem:[#allocation2 + $0x380] sm:$0xff] }
  0x70   :  { %586 = vmatpush1.bf16.msra.mxu0 %v418_v35  ;;  %505 = vmatprep.subr.bf16.mxu1 %v357_v36  ;;  %v294_v35 = vld [vmem:[#allocation2 + $0x780] sm:$0xff]  ;;  %v431_v36 = vpack.c.bf16 %v297_v29, %v295_v28  ;;  %v366_v42 = vpack.c.bf16 %v168_v34, %v166_v33  ;;  %v639_v28 = vld [vmem:[%s1069_s3 + $0xa8] sm:$0xff]  ;;  %v651_v29 = vpack.c.bf16 %v621_v26, %v620_v25  ;;  %v640_v33 = vld [vmem:[%s1069_s3 + $0xb0] sm:$0xff] }
  0x71   :  { %587 = vmatprep.subr.bf16.mxu0 %v421_v40  ;;  %v299_v40 = vld [vmem:[#allocation2 + $0x7a8] sm:$0xff]  ;;  %v430_v43 = vpack.c.bf16 %v296_v37, %v294_v35  ;;  %v641_v34 = vld [vmem:[%s1069_s3 + $0xb8] sm:$0xff]  ;;  %v624_v37 = vld [vmem:[%s1069_s3 + $0x30] sm:$0xff] }
  0x73   :  { %506 = vmatpush1.bf16.msra.mxu1 %v356_v46  ;;  %v172_v46 = vld [vmem:[#allocation2 + $0x3b0] sm:$0xff] }
  0x74   :  { %588 = vmatpush1.bf16.msra.mxu0 %v420_v47  ;;  %507 = vmatprep.subr.bf16.mxu1 %v359_v48  ;;  %v298_v47 = vld [vmem:[#allocation2 + $0x7a0] sm:$0xff]  ;;  %v433_v48 = vpack.c.bf16 %v301_v41, %v299_v40  ;;  %v368_v54 = vpack.c.bf16 %v172_v46, %v170_v45  ;;  %v643_v40 = vld [vmem:[%s1069_s3 + $0xc8] sm:$0xff]  ;;  %v653_v41 = vpack.c.bf16 %v625_v38, %v624_v37  ;;  %v644_v45 = vld [vmem:[%s1069_s3 + $0xd0] sm:$0xff] }
  0x75   :  { %589 = vmatprep.subr.bf16.mxu0 %v423_v52  ;;  %v303_v52 = vld [vmem:[#allocation2 + $0x7c8] sm:$0xff]  ;;  %v432_v55 = vpack.c.bf16 %v300_v49, %v298_v47  ;;  %v645_v46 = vld [vmem:[%s1069_s3 + $0xd8] sm:$0xff]  ;;  %v628_v49 = vld [vmem:[%s1069_s3 + $0x50] sm:$0xff] }
  0x76   :  { %v655_v51 = vpack.c.bf16 %v629_v50, %v628_v49  ;;  %v779_v37 = vld [vmem:[%s1070_s4] ss:$0 sm:$0xff] }
  0x77   :  { %508 = vmatpush1.bf16.msra.mxu1 %v358_v58  ;;  %v176_v58 = vld [vmem:[#allocation2 + $0x3d0] sm:$0xff] }
  0x78   :  { %590 = vmatpush1.bf16.msra.mxu0 %v422_v59  ;;  %509 = vmatprep.subr.bf16.mxu1 %v361_v60  ;;  %v302_v59 = vld [vmem:[#allocation2 + $0x7c0] sm:$0xff]  ;;  %v435_v60 = vpack.c.bf16 %v305_v53, %v303_v52  ;;  %v370_v2 = vpack.c.bf16 %v176_v58, %v174_v57  ;;  %v647_v53 = vld [vmem:[%s1069_s3 + $0xe8] sm:$0xff]  ;;  %v648_v58 = vld [vmem:[%s1069_s3 + $0xf0] sm:$0xff] }
  0x79   :  { %591 = vmatprep.subr.bf16.mxu0 %v425_v0  ;;  %v307_v0 = vld [vmem:[#allocation2 + $0x7e8] sm:$0xff]  ;;  %v434_v3 = vpack.c.bf16 %v304_v61, %v302_v59  ;;  %v646_v52 = vld [vmem:[%s1069_s3 + $0xe0] sm:$0xff]  ;;  %v649_v59 = vld [vmem:[%s1069_s3 + $0xf8] sm:$0xff] }
  0x7a   :  { %v632_v61 = vld [vmem:[%s1069_s3 + $0x70] sm:$0xff] }
  0x7b   :  { %510 = vmatpush1.bf16.msra.mxu1 %v360_v6  ;;  %v180_v6 = vld [vmem:[#allocation2 + $0x3f0] sm:$0xff]  ;;  %v657_v63 = vpack.c.bf16 %v633_v62, %v632_v61 }
  0x7c   :  { %592 = vmatpush1.bf16.msra.mxu0 %v424_v7  ;;  %511 = vmatprep.subr.bf16.mxu1 %v363_v8  ;;  %v437_v7 = vpack.c.bf16 %v309_v1, %v307_v0  ;;  %v306_v8 = vld [vmem:[#allocation2 + $0x7e0] sm:$0xff]  ;;  %v716_v1 = vld [vmem:[%s1071_s5 + $0x8] sm:$0xff] }
  0x7d   :  { %593 = vmatprep.subr.bf16.mxu0 %v427_v12  ;;  %v372_v12 = vpack.c.bf16 %v180_v6, %v178_v5  ;;  %v436_v14 = vpack.c.bf16 %v308_v9, %v306_v8  ;;  %v715_v0 = vld [vmem:[%s1071_s5] sm:$0xff]  ;;  %v718_v5 = vld [vmem:[%s1071_s5 + $0x18] sm:$0xff] }
  0x7f   :  { %512 = vmatpush1.bf16.msra.mxu1 %v362_v18  ;;  %v619_v18 = vld [vmem:[%s1069_s3 + $0x8] sm:$0xff] }
  0x80   :  { %594 = vmatpush1.bf16.msra.mxu0 %v426_v19  ;;  %513 = vmatprep.subr.bf16.mxu1 %v365_v20  ;;  %v48_v19 = vpack.c.bf16 %v40_v13, %v40_v13  ;;  %v636_v20 = vld [vmem:[%s1069_s3 + $0x90] sm:$0xff]  ;;  %v650_v23 = vpack.c.bf16 %v619_v18, %v618_v17 }
  0x81   :  { %595 = vmatprep.subr.bf16.mxu0 %v429_v24  ;;  %v659_v24 = vpack.c.bf16 %v637_v21, %v636_v20 }
  0x83   :  { %514 = vmatpush1.bf16.msra.mxu1 %v364_v30  ;;  %v660_v30 = vpack.c.bf16 %v639_v28, %v638_v27 }
  0x84   :  { %596 = vmatpush1.bf16.msra.mxu0 %v428_v31  ;;  %515 = vmatprep.subr.bf16.mxu1 %v367_v32  ;;  %v622_v31 = vld [vmem:[%s1069_s3 + $0x20] sm:$0xff]  ;;  %v623_v32 = vld [vmem:[%s1069_s3 + $0x28] sm:$0xff] }
  0x85   :  { %597 = vmatprep.subr.bf16.mxu0 %v431_v36  ;;  %v652_v35 = vpack.c.bf16 %v623_v32, %v622_v31  ;;  %v661_v36 = vpack.c.bf16 %v641_v34, %v640_v33  ;;  %v720_v31 = vld [vmem:[%s1071_s5 + $0x28] sm:$0xff]  ;;  %v721_v33 = vld [vmem:[%s1071_s5 + $0x30] sm:$0xff]  ;;  %v722_v34 = vld [vmem:[%s1071_s5 + $0x38] sm:$0xff] }
  0x87   :  { %516 = vmatpush1.bf16.msra.mxu1 %v366_v42  ;;  %v662_v42 = vpack.c.bf16 %v643_v40, %v642_v39 }
  0x88   :  { %598 = vmatpush1.bf16.msra.mxu0 %v430_v43  ;;  %517 = vmatprep.subr.bf16.mxu1 %v369_v44  ;;  %v626_v43 = vld [vmem:[%s1069_s3 + $0x40] sm:$0xff]  ;;  %v627_v44 = vld [vmem:[%s1069_s3 + $0x48] sm:$0xff] }
  0x89   :  { %599 = vmatprep.subr.bf16.mxu0 %v433_v48  ;;  %v654_v47 = vpack.c.bf16 %v627_v44, %v626_v43  ;;  %v663_v48 = vpack.c.bf16 %v645_v46, %v644_v45 }
  0x8b   :  { %518 = vmatpush1.bf16.msra.mxu1 %v368_v54  ;;  %v664_v54 = vpack.c.bf16 %v647_v53, %v646_v52 }
  0x8c   :  { %600 = vmatpush1.bf16.msra.mxu0 %v432_v55  ;;  %519 = vmatprep.subr.bf16.mxu1 %v371_v56  ;;  %v630_v55 = vld [vmem:[%s1069_s3 + $0x60] sm:$0xff]  ;;  %v631_v56 = vld [vmem:[%s1069_s3 + $0x68] sm:$0xff] }
  0x8d   :  { %601 = vmatprep.subr.bf16.mxu0 %v435_v60  ;;  %v656_v57 = vpack.c.bf16 %v631_v56, %v630_v55  ;;  %v665_v60 = vpack.c.bf16 %v649_v59, %v648_v58 }
  0x8f   :  { %520 = vmatpush1.bf16.msra.mxu1 %v370_v2  ;;  %v717_v2 = vld [vmem:[%s1071_s5 + $0x10] sm:$0xff] }
  0x90   :  { %602 = vmatpush1.bf16.msra.mxu0 %v434_v3  ;;  %521 = vmatprep.subr.bf16.mxu1 %v373_v4  ;;  %v864_v3 = vmov 0.0   ;;  %v723_v4 = vpack.c.bf16 %v716_v1, %v715_v0  ;;  %v724_v6 = vpack.c.bf16 %v718_v5, %v717_v2 }
  0x91   :  { %603 = vmatprep.subr.bf16.mxu0 %v437_v7  ;;  %v440_v7 = vlaneseq }
  0x93   :  { %522 = vmatpush1.bf16.msra.mxu1 %v372_v12  ;;  %v441_v8 = vshrl.u32 %v440_v7, 7 }
  0x94   :  { %604 = vmatpush1.bf16.msra.mxu0 %v436_v14  ;;  %808 = vmatprep.subr.bf16.mxu1 %v864_v3 }
  0x95   :  { %781 = vmatprep.subr.bf16.mxu0 %v658_v16  ;;  %v442_v9 = vsub.s32 0, %v441_v8  ;;  %v446_v11 = vsub.s32 1, %v441_v8 }
  0x96   :  { %524 = vmatmul.mubr.bf16.vlgmr.msra.gmra.mrb[0].mxu1 %v48_v19 }
  0x97   :  { %606 = vmatmul.mubr.bf16.vlgmr.msra.gmra.mrb[0].mxu0 %v52_v22  ;;  %809 = vmatpush3.bf16.msra.mxu1 %v723_v4  ;;  %v443_v12 = vrot.slane %v438_v10, %v442_v9  ;;  %v447_v13 = vrot.slane %v438_v10, %v446_v11 }
  0x98   :  { %782 = vmatpush3.bf16.msra.mxu0 %v650_v23  ;;  %810 = vmatprep.subr.bf16.mxu1 %v864_v3 }
  0x99   :  { %783 = vmatprep.subr.bf16.mxu0 %v659_v24  ;;  %816 = vmatprep.mubr.msk.bf16.mxu1 %vm865_vm0, %v864_v3 }
  0x9b   :  { %811 = vmatpush3.bf16.msra.mxu1 %v724_v6 }
  0x9c   :  { %784 = vmatpush3.bf16.msra.mxu0 %v651_v29  ;;  %812 = vmatprep.subr.bf16.mxu1 %v864_v3 }
  0x9d   :  { %785 = vmatprep.subr.bf16.mxu0 %v660_v30  ;;  %v719_v30 = vld [vmem:[%s1071_s5 + $0x20] sm:$0xff] }
  0x9e   :  { %v725_v32 = vpack.c.bf16 %v720_v31, %v719_v30 }
  0xa0   :  { %786 = vmatpush3.bf16.msra.mxu0 %v652_v35  ;;  %813 = vmatpush3.bf16.msra.mxu1 %v725_v32  ;;  %v726_v35 = vpack.c.bf16 %v722_v34, %v721_v33 }
  0xa1   :  { %787 = vmatprep.subr.bf16.mxu0 %v661_v36  ;;  %814 = vmatprep.subr.bf16.mxu1 %v864_v3 }
  0xa4   :  { %788 = vmatpush3.bf16.msra.mxu0 %v653_v41  ;;  %815 = vmatpush3.bf16.msra.mxu1 %v726_v35 }
  0xa5   :  { %789 = vmatprep.subr.bf16.mxu0 %v662_v42 }
  0xa8   :  { %790 = vmatpush3.bf16.msra.mxu0 %v654_v47 }
  0xa9   :  { %791 = vmatprep.subr.bf16.mxu0 %v663_v48 }
  0xac   :  { %792 = vmatpush3.bf16.msra.mxu0 %v655_v51 }
  0xad   :  { %793 = vmatprep.subr.bf16.mxu0 %v664_v54 }
  0xb0   :  { %794 = vmatpush3.bf16.msra.mxu0 %v656_v57 }
  0xb1   :  { %795 = vmatprep.subr.bf16.mxu0 %v665_v60 }
  0xb4   :  { %796 = vmatpush3.bf16.msra.mxu0 %v657_v63 }
 0x169   :  { %v525_v14 = vpop.f32.mrb[0].mxu1 }
 0x16a   :  { %v820_v15 = vadd.f32 %v525_v14, %v443_v12  ;;  %v607_v16 = vpop.f32.mrb[0].mxu0  ;;  %v527_v17 = vpop.f32.mrb[1].mxu1 }
 0x16b   :  { %v822_v18 = vadd.f32 %v527_v17, %v447_v13  ;;  %v609_v19 = vpop.f32.mrb[1].mxu0  ;;  %v529_v20 = vpop.f32.mrb[2].mxu1 }
 0x16c   :  { %v821_v21 = vadd.f32 %v820_v15, %v607_v16  ;;  %v611_v22 = vpop.f32.mrb[2].mxu0  ;;  %v530_v23 = vpop.f32.mrb[3].mxu1 }
 0x16d   :  { %v823_v24 = vadd.f32 %v822_v18, %v609_v19  ;;  %v612_v25 = vpop.f32.mrb[3].mxu0 }
 0x16e   :  { %v614_v26 = vmax.f32 %v821_v21, 0.0 }
 0x16f   :  { %v615_v27 = vmax.f32 %v823_v24, 0.0 }
 0x170   :  { %v616_v29 = vpack.c.bf16 %v614_v26, %v614_v26 }
 0x171   :  { %v617_v28 = vpack.c.bf16 %v615_v27, %v615_v27 }
 0x173   :  { %705 = vmatprep.mubr.bf16.mxu0 %v617_v28 }
 0x174   :  { %706 = vmatmul.mubr.bf16.vlgmr.msra.gmra.mrb[4].mxu0 %v616_v29 }
 0x247   :  { %v797_v36 = vpop.f32.mrb[4].mxu0 }
 0x248   :  { %v798_v38 = vpop.f32.mrb[5].mxu0 }
 0x249   :  { %v799_v39 = vadd.f32 %v798_v38, %v797_v36  ;;  %v800_v40 = vpop.f32.mrb[6].mxu0 }
 0x24a   :  { %v801_v41 = vpop.f32.mrb[7].mxu0 }
 0x24b   :  { %v708_v42 = vadd.f32 %v799_v39, %v779_v37 }
 0x24d   :  { %v713_v43 = vmax.f32 %v708_v42, 0.0 }
 0x24f   :  { %v714_v44 = vpack.c.bf16 %v713_v43, %v713_v43 }
 0x251   :  { %817 = vmatmul.mubr.msk.bf16.vlgmr.msra.gmra.mrb[4].mxu1 %vm727_vm1, %v714_v44 }
 0x324   :  { %v765_v45 = vpop.f32.mrb[4].mxu1 }
 0x325   :  { %v771_v46 = vmax.f32 %v765_v45, 0.0  ;;  %v818_v47 = vpop.f32.mrb[5].mxu1 }
 0x326   :  { %v768_v48 = vpop.f32.mrb[6].mxu1 }
 0x327   :  { %773 = vst.msk [vmem:[%s1072_s6] sm:$0xff] %vm772_vm2, %v771_v46  ;;  %v819_v49 = vpop.f32.mrb[7].mxu1 }
 0x328   :  { %778 = vsyncpa [#allocation3], 1 }

</bundles_post_ra>
